<compile_context>
chip_gen: v5e
topology: v5e:2x2
jax: 0.10.0
libtpu: 0.0.40
codegen_flags: <defaults>
</compile_context>

<pallas_src>
from functools import partial
from math import sqrt

import jax
import jax.numpy as jnp
from jax.experimental import pallas as pl
from jax.experimental.pallas import tpu as pltpu


# ---------------------------------------------------------------------------
# Fused attention kernel (grid over flattened query-row tiles).
# ---------------------------------------------------------------------------
def _make_attn_kernel(use_mask: bool):
    def kernel(ctx_ref, wq_ref, wk_ref, wv_ref, wo_ref,
               bq_ref, bk_ref, bv_ref, bo_ref, *rest):
        if use_mask:
            kbias_ref, q_ref, out_ref, kt_ref, v_ref = rest
        else:
            q_ref, out_ref, kt_ref, v_ref = rest

        # ---- One-time K/V projection of the shared context into persistent scratch ----
        @pl.when(pl.program_id(0) == 0)
        def _():
            ctx = ctx_ref[...]                                    # (Lk_pad, E) bf16
            k = jnp.dot(ctx, wk_ref[...],
                        preferred_element_type=jnp.float32) + bk_ref[...]
            v = jnp.dot(ctx, wv_ref[...],
                        preferred_element_type=jnp.float32) + bv_ref[...]
            # Pay the K transpose once here (XLU), not per grid step in the score matmul.
            kt_ref[...] = k.T.astype(jnp.bfloat16)                # (E, Lk_pad) bf16
            v_ref[...] = v.astype(jnp.bfloat16)                   # (Lk_pad, E) bf16

        # ---- Per-tile attention ----
        x = q_ref[...]                                            # (TM, E) bf16
        # Q projection; the 1/sqrt(E) scale is already folded into wq/bq by the wrapper.
        q = jnp.dot(x, wq_ref[...],
                    preferred_element_type=jnp.float32) + bq_ref[...]

        # Scores: plain dot against the pre-transposed K (no per-step relayout).
        s = jnp.dot(q.astype(jnp.bfloat16), kt_ref[...],
                    preferred_element_type=jnp.float32)           # (TM, Lk_pad) f32
        if use_mask:
            s = s + kbias_ref[...]                                # mask padded keys (-1e30)

        # Numerically-stable softmax; stats in f32.
        m = jnp.max(s, axis=-1, keepdims=True)
        p = jnp.exp(s - m)
        l = jnp.sum(p, axis=-1, keepdims=True)
        a = jnp.dot(p.astype(jnp.bfloat16), v_ref[...],
                    preferred_element_type=jnp.float32)           # (TM, E) f32
        a = a * pl.reciprocal(l, approx=False)                    # exact EUP reciprocal

        # Output projection.
        out_ref[...] = (jnp.dot(a.astype(jnp.bfloat16), wo_ref[...],
                                preferred_element_type=jnp.float32)
                        + bo_ref[...]).astype(out_ref.dtype)

    return kernel


# ---------------------------------------------------------------------------
# Wrapper (jitted: weight prep constant-folds / fuses).
# ---------------------------------------------------------------------------
@partial(jax.jit, static_argnames=("tm",))
def cross_attention(query_batch, context, params, *, tm=512):
    """query_batch: (BS, Lq, E) f32, context: (Lk, E) f32 -> (BS, Lq, E) f32."""
    BS, Lq, E = query_batch.shape
    Lk, _ = context.shape

    scale = 1.0 / sqrt(E)
    # PyTorch Linear semantics: y = x @ W^T + b.  Fold the attention scale into Wq/bq.
    # MXU operands pre-cast to bf16 (accumulation stays f32 in-kernel).
    wq_t = (params["wq"].T * scale).astype(jnp.bfloat16)
    wk_t = params["wk"].T.astype(jnp.bfloat16)
    wv_t = params["wv"].T.astype(jnp.bfloat16)
    wo_t = params["wo"].T.astype(jnp.bfloat16)
    bq = (params["bq"] * scale).reshape(1, E).astype(jnp.float32)
    bk = params["bk"].reshape(1, E).astype(jnp.float32)
    bv = params["bv"].reshape(1, E).astype(jnp.float32)
    bo = params["bo"].reshape(1, E).astype(jnp.float32)

    # Lane-dense key dimension: pad Lk up to a multiple of 128, mask only if needed.
    lk_pad = max(128, ((Lk + 127) // 128) * 128)
    use_mask = lk_pad != Lk
    ctx_pad = context if not use_mask else jnp.pad(context, ((0, lk_pad - Lk), (0, 0)))
    ctx_pad = ctx_pad.astype(jnp.bfloat16)

    # Flatten the batch into the matmul M dimension; bf16 row tiles need 16-row alignment.
    M = BS * Lq
    tm_eff = ((min(tm, M) + 15) // 16) * 16
    m_pad = ((M + tm_eff - 1) // tm_eff) * tm_eff
    q_flat = query_batch.reshape(M, E)
    if m_pad != M:
        q_flat = jnp.pad(q_flat, ((0, m_pad - M), (0, 0)))
    q_flat = q_flat.astype(jnp.bfloat16)

    grid = (m_pad // tm_eff,)
    const2d = lambda i: (0, 0)
    invariant = pl.Buffered(1)   # single-buffer grid-invariant operands (no dead copy)

    in_specs = [
        pl.BlockSpec((lk_pad, E), const2d, pipeline_mode=invariant),  # context (padded)
        pl.BlockSpec((E, E), const2d, pipeline_mode=invariant),       # Wq^T (scale folded)
        pl.BlockSpec((E, E), const2d, pipeline_mode=invariant),       # Wk^T
        pl.BlockSpec((E, E), const2d, pipeline_mode=invariant),       # Wv^T
        pl.BlockSpec((E, E), const2d, pipeline_mode=invariant),       # Wo^T
        pl.BlockSpec((1, E), const2d, pipeline_mode=invariant),       # bq (scaled)
        pl.BlockSpec((1, E), const2d, pipeline_mode=invariant),       # bk
        pl.BlockSpec((1, E), const2d, pipeline_mode=invariant),       # bv
        pl.BlockSpec((1, E), const2d, pipeline_mode=invariant),       # bo
    ]
    operands = [ctx_pad, wq_t, wk_t, wv_t, wo_t, bq, bk, bv, bo]
    if use_mask:
        kbias = jnp.where(jnp.arange(lk_pad) < Lk, 0.0, -1e30)
        kbias = kbias.astype(jnp.float32).reshape(1, lk_pad)
        in_specs.append(pl.BlockSpec((1, lk_pad), const2d, pipeline_mode=invariant))
        operands.append(kbias)
    in_specs.append(pl.BlockSpec((tm_eff, E), lambda i: (i, 0)))      # query row tile
    operands.append(q_flat)

    flops = (2 * m_pad * E * E * 2          # Q and output projections
             + 2 * m_pad * lk_pad * E * 2   # scores + PV
             + 2 * lk_pad * E * E * 2)      # one-time K/V projections
    bytes_accessed = (m_pad * E * 2 + m_pad * E * 4        # q in (bf16) / out (f32)
                      + lk_pad * E * 2 + 4 * E * E * 2     # context + weights (bf16)
                      + 4 * E * 4 + lk_pad * 4)            # biases + mask

    out_flat = pl.pallas_call(
        _make_attn_kernel(use_mask),
        out_shape=jax.ShapeDtypeStruct((m_pad, E), jnp.float32),
        grid_spec=pltpu.PrefetchScalarGridSpec(
            num_scalar_prefetch=0,
            grid=grid,
            in_specs=in_specs,
            out_specs=pl.BlockSpec((tm_eff, E), lambda i: (i, 0)),
            scratch_shapes=[
                pltpu.VMEM((E, lk_pad), jnp.bfloat16),     # K^T (persists across steps)
                pltpu.VMEM((lk_pad, E), jnp.bfloat16),     # V
            ],
        ),
        compiler_params=pltpu.CompilerParams(
            # "arbitrary": the K/V scratch is filled at step 0 and reused by later steps,
            # so the row axis must run sequentially on one core.
            dimension_semantics=("arbitrary",),
            vmem_limit_bytes=64 * 1024 * 1024,
        ),
        cost_estimate=pl.CostEstimate(
            flops=flops,
            transcendentals=m_pad * lk_pad,
            bytes_accessed=bytes_accessed,
        ),
    )(*operands)

    return out_flat[:M].reshape(BS, Lq, E)


# ---------------------------------------------------------------------------
# Pure-JAX reference (mirrors nn.MultiheadAttention(num_heads=1, batch_first=True)).
# ---------------------------------------------------------------------------
def reference_cross_attention(query_batch, context, params):
    E = query_batch.shape[-1]
    ctx_b = jnp.broadcast_to(context[None], (query_batch.shape[0],) + context.shape)
    q = query_batch @ params["wq"].T + params["bq"]
    k = ctx_b @ params["wk"].T + params["bk"]
    v = ctx_b @ params["wv"].T + params["bv"]
    s = jnp.einsum("bqe,bke->bqk", q, k) / sqrt(E)
    p = jax.nn.softmax(s, axis=-1)
    a = jnp.einsum("bqk,bke->bqe", p, v)
    return a @ params["wo"].T + params["bo"]


def init_params(key, embed_dim):
    # Synthetic parameters matching nn.MultiheadAttention shapes:
    # in_proj_weight (3E, E) split into Wq/Wk/Wv, in_proj_bias (3E,), out_proj (E, E) + (E,).
    keys = jax.random.split(key, 8)
    s = 1.0 / sqrt(embed_dim)
    return {
        "wq": jax.random.normal(keys[0], (embed_dim, embed_dim), jnp.float32) * s,
        "wk": jax.random.normal(keys[1], (embed_dim, embed_dim), jnp.float32) * s,
        "wv": jax.random.normal(keys[2], (embed_dim, embed_dim), jnp.float32) * s,
        "wo": jax.random.normal(keys[3], (embed_dim, embed_dim), jnp.float32) * s,
        "bq": jax.random.normal(keys[4], (embed_dim,), jnp.float32) * 0.01,
        "bk": jax.random.normal(keys[5], (embed_dim,), jnp.float32) * 0.01,
        "bv": jax.random.normal(keys[6], (embed_dim,), jnp.float32) * 0.01,
        "bo": jax.random.normal(keys[7], (embed_dim,), jnp.float32) * 0.01,
    }


if __name__ == "__main__":
    # Small shapes consistent with the module (embed_dim scaled down from 768 -> 128).
    BS, Lq, Lk, E = 2, 8, 16, 128

    key = jax.random.PRNGKey(0)
    k_q, k_c, k_p = jax.random.split(key, 3)
    query_batch = jax.random.normal(k_q, (BS, Lq, E), jnp.float32)
    context = jax.random.normal(k_c, (Lk, E), jnp.float32)
    params = init_params(k_p, E)

    # Default tm clamps to M=16 -> a single dense grid step (no tiny-tile splitting).
    out = cross_attention(query_batch, context, params)
    out = jax.block_until_ready(out)

    ref = reference_cross_attention(query_batch, context, params)
    assert out.shape == (BS, Lq, E)
    # Tolerance reflects bf16 MXU operands (f32 accumulation, f32 softmax stats).
    assert jnp.allclose(out, ref, atol=5e-2, rtol=5e-2), "mismatch vs reference"

    print("KERNEL_OK")
</pallas_src>

<mosaic_0001>
module attributes {stable_mosaic.version = 11 : i64} {
  func.func @kernel(%arg0: i32, %arg1: memref<128x128xbf16, #tpu.memory_space<vmem>>, %arg2: memref<128x128xbf16, #tpu.memory_space<vmem>>, %arg3: memref<128x128xbf16, #tpu.memory_space<vmem>>, %arg4: memref<128x128xbf16, #tpu.memory_space<vmem>>, %arg5: memref<128x128xbf16, #tpu.memory_space<vmem>>, %arg6: memref<1x128xf32, #tpu.memory_space<vmem>>, %arg7: memref<1x128xf32, #tpu.memory_space<vmem>>, %arg8: memref<1x128xf32, #tpu.memory_space<vmem>>, %arg9: memref<1x128xf32, #tpu.memory_space<vmem>>, %arg10: memref<1x128xf32, #tpu.memory_space<vmem>>, %arg11: memref<16x128xbf16, #tpu.memory_space<vmem>>, %arg12: memref<16x128xf32, #tpu.memory_space<vmem>>, %arg13: memref<128x128xbf16, #tpu.memory_space<vmem>>, %arg14: memref<128x128xbf16, #tpu.memory_space<vmem>>) attributes {dimension_semantics = [#tpu.dimension_semantics<arbitrary>], iteration_bounds = array<i64: 1>, scalar_prefetch = 0 : i64, scratch_operands = 2 : i64, tpu.core_type = #tpu.core_type<tc>, window_params = [{pipeline_mode = #tpu.pipeline_mode<synchronous>, transform_indices = @transform_0, window_bounds = array<i64: 128, 128>}, {pipeline_mode = #tpu.pipeline_mode<synchronous>, transform_indices = @transform_1, window_bounds = array<i64: 128, 128>}, {pipeline_mode = #tpu.pipeline_mode<synchronous>, transform_indices = @transform_2, window_bounds = array<i64: 128, 128>}, {pipeline_mode = #tpu.pipeline_mode<synchronous>, transform_indices = @transform_3, window_bounds = array<i64: 128, 128>}, {pipeline_mode = #tpu.pipeline_mode<synchronous>, transform_indices = @transform_4, window_bounds = array<i64: 128, 128>}, {pipeline_mode = #tpu.pipeline_mode<synchronous>, transform_indices = @transform_5, window_bounds = array<i64: 1, 128>}, {pipeline_mode = #tpu.pipeline_mode<synchronous>, transform_indices = @transform_6, window_bounds = array<i64: 1, 128>}, {pipeline_mode = #tpu.pipeline_mode<synchronous>, transform_indices = @transform_7, window_bounds = array<i64: 1, 128>}, {pipeline_mode = #tpu.pipeline_mode<synchronous>, transform_indices = @transform_8, window_bounds = array<i64: 1, 128>}, {pipeline_mode = #tpu.pipeline_mode<synchronous>, transform_indices = @transform_9, window_bounds = array<i64: 1, 128>}, {transform_indices = @transform_10, window_bounds = array<i64: 16, 128>}, {transform_indices = @transform_11, window_bounds = array<i64: 16, 128>}]} {
    %c0_i32 = arith.constant 0 : i32
    %0 = arith.cmpi eq, %arg0, %c0_i32 : i32
    %1 = arith.extui %0 : i1 to i32
    %c0_i32_0 = arith.constant 0 : i32
    %2 = arith.cmpi ne, %1, %c0_i32_0 : i32
    scf.if %2 {
      %c0_23 = arith.constant 0 : index
      %c0_24 = arith.constant 0 : index
      %35 = vector.load %arg1[%c0_23, %c0_24] : memref<128x128xbf16, #tpu.memory_space<vmem>>, vector<128x128xbf16>
      %c0_25 = arith.constant 0 : index
      %c0_26 = arith.constant 0 : index
      %36 = vector.load %arg3[%c0_25, %c0_26] : memref<128x128xbf16, #tpu.memory_space<vmem>>, vector<128x128xbf16>
      %cst_27 = arith.constant dense<0.000000e+00> : vector<128x128xf32>
      %37 = tpu.matmul %35, %36, %cst_27 {dimension_numbers = #tpu.dot_dimension_numbers<[1], [0], [0], [1], [0, 0, 1, 1], [], []>} : vector<128x128xbf16>, vector<128x128xbf16>, vector<128x128xf32> -> vector<128x128xf32>
      %c0_28 = arith.constant 0 : index
      %c0_29 = arith.constant 0 : index
      %38 = vector.load %arg7[%c0_28, %c0_29] : memref<1x128xf32, #tpu.memory_space<vmem>>, vector<1x128xf32>
      %39 = vector.broadcast %38 : vector<1x128xf32> to vector<128x128xf32>
      %40 = arith.addf %37, %39 : vector<128x128xf32>
      %c0_30 = arith.constant 0 : index
      %c0_31 = arith.constant 0 : index
      %41 = vector.load %arg4[%c0_30, %c0_31] : memref<128x128xbf16, #tpu.memory_space<vmem>>, vector<128x128xbf16>
      %cst_32 = arith.constant dense<0.000000e+00> : vector<128x128xf32>
      %42 = tpu.matmul %35, %41, %cst_32 {dimension_numbers = #tpu.dot_dimension_numbers<[1], [0], [0], [1], [0, 0, 1, 1], [], []>} : vector<128x128xbf16>, vector<128x128xbf16>, vector<128x128xf32> -> vector<128x128xf32>
      %c0_33 = arith.constant 0 : index
      %c0_34 = arith.constant 0 : index
      %43 = vector.load %arg8[%c0_33, %c0_34] : memref<1x128xf32, #tpu.memory_space<vmem>>, vector<1x128xf32>
      %44 = vector.broadcast %43 : vector<1x128xf32> to vector<128x128xf32>
      %45 = arith.addf %42, %44 : vector<128x128xf32>
      %46 = tpu.transpose %40, [1, 0] : vector<128x128xf32> -> vector<128x128xf32>
      %47 = arith.truncf %46 : vector<128x128xf32> to vector<128x128xbf16>
      %c0_35 = arith.constant 0 : index
      %c0_36 = arith.constant 0 : index
      %48 = vector.load %arg13[%c0_35, %c0_36] : memref<128x128xbf16, #tpu.memory_space<vmem>>, vector<128x128xbf16>
      tpu.vector_store %arg13[%c0_35, %c0_36], %47 {strides = array<i32>} : memref<128x128xbf16, #tpu.memory_space<vmem>>, vector<128x128xbf16>,
      %49 = arith.truncf %45 : vector<128x128xf32> to vector<128x128xbf16>
      %c0_37 = arith.constant 0 : index
      %c0_38 = arith.constant 0 : index
      %50 = vector.load %arg14[%c0_37, %c0_38] : memref<128x128xbf16, #tpu.memory_space<vmem>>, vector<128x128xbf16>
      tpu.vector_store %arg14[%c0_37, %c0_38], %49 {strides = array<i32>} : memref<128x128xbf16, #tpu.memory_space<vmem>>, vector<128x128xbf16>,
    } else {
    }
    %c0 = arith.constant 0 : index
    %c0_1 = arith.constant 0 : index
    %3 = vector.load %arg11[%c0, %c0_1] : memref<16x128xbf16, #tpu.memory_space<vmem>>, vector<16x128xbf16>
    %c0_2 = arith.constant 0 : index
    %c0_3 = arith.constant 0 : index
    %4 = vector.load %arg2[%c0_2, %c0_3] : memref<128x128xbf16, #tpu.memory_space<vmem>>, vector<128x128xbf16>
    %cst = arith.constant dense<0.000000e+00> : vector<16x128xf32>
    %5 = tpu.matmul %3, %4, %cst {dimension_numbers = #tpu.dot_dimension_numbers<[1], [0], [0], [1], [0, 0, 1, 1], [], []>} : vector<16x128xbf16>, vector<128x128xbf16>, vector<16x128xf32> -> vector<16x128xf32>
    %c0_4 = arith.constant 0 : index
    %c0_5 = arith.constant 0 : index
    %6 = vector.load %arg6[%c0_4, %c0_5] : memref<1x128xf32, #tpu.memory_space<vmem>>, vector<1x128xf32>
    %7 = vector.broadcast %6 : vector<1x128xf32> to vector<16x128xf32>
    %8 = arith.addf %5, %7 : vector<16x128xf32>
    %9 = arith.truncf %8 : vector<16x128xf32> to vector<16x128xbf16>
    %c0_6 = arith.constant 0 : index
    %c0_7 = arith.constant 0 : index
    %10 = vector.load %arg13[%c0_6, %c0_7] : memref<128x128xbf16, #tpu.memory_space<vmem>>, vector<128x128xbf16>
    %cst_8 = arith.constant dense<0.000000e+00> : vector<16x128xf32>
    %11 = tpu.matmul %9, %10, %cst_8 {dimension_numbers = #tpu.dot_dimension_numbers<[1], [0], [0], [1], [0, 0, 1, 1], [], []>} : vector<16x128xbf16>, vector<128x128xbf16>, vector<16x128xf32> -> vector<16x128xf32>
    %c0_9 = arith.constant 0 : index
    %c0_10 = arith.constant 0 : index
    %12 = vector.load %arg10[%c0_9, %c0_10] : memref<1x128xf32, #tpu.memory_space<vmem>>, vector<1x128xf32>
    %13 = vector.broadcast %12 : vector<1x128xf32> to vector<16x128xf32>
    %14 = arith.addf %11, %13 : vector<16x128xf32>
    %cst_11 = arith.constant dense<0xFF800000> : vector<16xf32>
    %15 = vector.multi_reduction <maximumf>, %14, %cst_11 [1] : vector<16x128xf32> to vector<16xf32>
    %16 = vector.shape_cast %15 : vector<16xf32> to vector<16x1xf32>
    %17 = vector.broadcast %16 : vector<16x1xf32> to vector<16x128xf32>
    %18 = arith.subf %14, %17 : vector<16x128xf32>
    %19 = math.exp %18 : vector<16x128xf32>
    %cst_12 = arith.constant dense<0.000000e+00> : vector<16xf32>
    %20 = vector.multi_reduction <add>, %19, %cst_12 [1] : vector<16x128xf32> to vector<16xf32>
    %21 = vector.shape_cast %20 : vector<16xf32> to vector<16x1xf32>
    %22 = arith.truncf %19 : vector<16x128xf32> to vector<16x128xbf16>
    %c0_13 = arith.constant 0 : index
    %c0_14 = arith.constant 0 : index
    %23 = vector.load %arg14[%c0_13, %c0_14] : memref<128x128xbf16, #tpu.memory_space<vmem>>, vector<128x128xbf16>
    %cst_15 = arith.constant dense<0.000000e+00> : vector<16x128xf32>
    %24 = tpu.matmul %22, %23, %cst_15 {dimension_numbers = #tpu.dot_dimension_numbers<[1], [0], [0], [1], [0, 0, 1, 1], [], []>} : vector<16x128xbf16>, vector<128x128xbf16>, vector<16x128xf32> -> vector<16x128xf32>
    %25 = tpu.reciprocal %21 : vector<16x1xf32> -> vector<16x1xf32>
    %26 = vector.broadcast %25 : vector<16x1xf32> to vector<16x128xf32>
    %27 = arith.mulf %24, %26 : vector<16x128xf32>
    %28 = arith.truncf %27 : vector<16x128xf32> to vector<16x128xbf16>
    %c0_16 = arith.constant 0 : index
    %c0_17 = arith.constant 0 : index
    %29 = vector.load %arg5[%c0_16, %c0_17] : memref<128x128xbf16, #tpu.memory_space<vmem>>, vector<128x128xbf16>
    %cst_18 = arith.constant dense<0.000000e+00> : vector<16x128xf32>
    %30 = tpu.matmul %28, %29, %cst_18 {dimension_numbers = #tpu.dot_dimension_numbers<[1], [0], [0], [1], [0, 0, 1, 1], [], []>} : vector<16x128xbf16>, vector<128x128xbf16>, vector<16x128xf32> -> vector<16x128xf32>
    %c0_19 = arith.constant 0 : index
    %c0_20 = arith.constant 0 : index
    %31 = vector.load %arg9[%c0_19, %c0_20] : memref<1x128xf32, #tpu.memory_space<vmem>>, vector<1x128xf32>
    %32 = vector.broadcast %31 : vector<1x128xf32> to vector<16x128xf32>
    %33 = arith.addf %30, %32 : vector<16x128xf32>
    %c0_21 = arith.constant 0 : index
    %c0_22 = arith.constant 0 : index
    %34 = vector.load %arg12[%c0_21, %c0_22] : memref<16x128xf32, #tpu.memory_space<vmem>>, vector<16x128xf32>
    tpu.vector_store %arg12[%c0_21, %c0_22], %33 {strides = array<i32>} : memref<16x128xf32, #tpu.memory_space<vmem>>, vector<16x128xf32>,
    return
  }
  func.func @transform_0(%arg0: i32) -> (i32, i32) {
    %c0_i32 = arith.constant 0 : i32
    %c0_i32_0 = arith.constant 0 : i32
    %c0_i32_1 = arith.constant 0 : i32
    return %c0_i32, %c0_i32_0 : i32, i32
  }
  func.func @transform_1(%arg0: i32) -> (i32, i32) {
    %c0_i32 = arith.constant 0 : i32
    %c0_i32_0 = arith.constant 0 : i32
    %c0_i32_1 = arith.constant 0 : i32
    return %c0_i32, %c0_i32_0 : i32, i32
  }
  func.func @transform_2(%arg0: i32) -> (i32, i32) {
    %c0_i32 = arith.constant 0 : i32
    %c0_i32_0 = arith.constant 0 : i32
    %c0_i32_1 = arith.constant 0 : i32
    return %c0_i32, %c0_i32_0 : i32, i32
  }
  func.func @transform_3(%arg0: i32) -> (i32, i32) {
    %c0_i32 = arith.constant 0 : i32
    %c0_i32_0 = arith.constant 0 : i32
    %c0_i32_1 = arith.constant 0 : i32
    return %c0_i32, %c0_i32_0 : i32, i32
  }
  func.func @transform_4(%arg0: i32) -> (i32, i32) {
    %c0_i32 = arith.constant 0 : i32
    %c0_i32_0 = arith.constant 0 : i32
    %c0_i32_1 = arith.constant 0 : i32
    return %c0_i32, %c0_i32_0 : i32, i32
  }
  func.func @transform_5(%arg0: i32) -> (i32, i32) {
    %c0_i32 = arith.constant 0 : i32
    %c0_i32_0 = arith.constant 0 : i32
    %c0_i32_1 = arith.constant 0 : i32
    return %c0_i32, %c0_i32_0 : i32, i32
  }
  func.func @transform_6(%arg0: i32) -> (i32, i32) {
    %c0_i32 = arith.constant 0 : i32
    %c0_i32_0 = arith.constant 0 : i32
    %c0_i32_1 = arith.constant 0 : i32
    return %c0_i32, %c0_i32_0 : i32, i32
  }
  func.func @transform_7(%arg0: i32) -> (i32, i32) {
    %c0_i32 = arith.constant 0 : i32
    %c0_i32_0 = arith.constant 0 : i32
    %c0_i32_1 = arith.constant 0 : i32
    return %c0_i32, %c0_i32_0 : i32, i32
  }
  func.func @transform_8(%arg0: i32) -> (i32, i32) {
    %c0_i32 = arith.constant 0 : i32
    %c0_i32_0 = arith.constant 0 : i32
    %c0_i32_1 = arith.constant 0 : i32
    return %c0_i32, %c0_i32_0 : i32, i32
  }
  func.func @transform_9(%arg0: i32) -> (i32, i32) {
    %c0_i32 = arith.constant 0 : i32
    %c0_i32_0 = arith.constant 0 : i32
    %c0_i32_1 = arith.constant 0 : i32
    return %c0_i32, %c0_i32_0 : i32, i32
  }
  func.func @transform_10(%arg0: i32) -> (i32, i32) {
    %c0_i32 = arith.constant 0 : i32
    %c0_i32_0 = arith.constant 0 : i32
    return %arg0, %c0_i32 : i32, i32
  }
  func.func @transform_11(%arg0: i32) -> (i32, i32) {
    %c0_i32 = arith.constant 0 : i32
    %c0_i32_0 = arith.constant 0 : i32
    return %arg0, %c0_i32 : i32, i32
  }
}

</mosaic_0001>

<bundles_post_ra>
// kernel: cross_attention.1
= control target key start
LH: loop header
LB: loop body
LE: loop exit
PB: predicated region body
PF: predicated region fallthrough
CT: control target
= control target key end

     0   :  { %s1509_s0 = inlined_call_operand.vmem [shape: bf16[128,128], index: 0, kind: input, shape index: {}]   ;;  %s1510_s1 = inlined_call_operand.vmem [shape: bf16[128,128], index: 1, kind: input, shape index: {}]   ;;  %s1511_s2 = inlined_call_operand.vmem [shape: bf16[128,128], index: 2, kind: input, shape index: {}]   ;;  %s1512_s3 = inlined_call_operand.vmem [shape: bf16[128,128], index: 3, kind: input, shape index: {}]   ;;  %s1513_s4 = inlined_call_operand.vmem [shape: bf16[128,128], index: 4, kind: input, shape index: {}]   ;;  %s1514_s5 = inlined_call_operand.vmem [shape: f32[1,128], index: 5, kind: input, shape index: {}]   ;;  %s1515_s6 = inlined_call_operand.vmem [shape: f32[1,128], index: 6, kind: input, shape index: {}]   ;;  %s1516_s7 = inlined_call_operand.vmem [shape: f32[1,128], index: 7, kind: input, shape index: {}]   ;;  %s1517_s8 = inlined_call_operand.vmem [shape: f32[1,128], index: 8, kind: input, shape index: {}]   ;;  %s1518_s9 = inlined_call_operand.vmem [shape: f32[1,128], index: 9, kind: input, shape index: {}]   ;;  %s1519_s10 = inlined_call_operand.vmem [shape: bf16[16,128], index: 10, kind: input, shape index: {}]   ;;  %s1520_s11 = inlined_call_operand.hbm [shape: f32[16,128], index: 11, kind: output, shape index: {}]  }
   0x1   :  { %v1079_v0 = vld [vmem:[%s1511_s2 + $0x38] sm:$0xff]  ;;  %v1078_v1 = vld [vmem:[%s1511_s2 + $0x30] sm:$0xff] }
   0x2   :  { %175 = vmatpush.bf16.msra.mxu0 %v1079_v0  ;;  %1215 = vmatpush.bf16.msra.mxu2 %v1079_v0 }
   0x3   :  { %16 = vsyncpa [#allocation5], 0  ;;  %v1077_v2 = vld [vmem:[%s1511_s2 + $0x28] sm:$0xff]  ;;  %v1076_v3 = vld [vmem:[%s1511_s2 + $0x20] sm:$0xff]  ;;  %s1273_s15 = smov [#allocation4]   ;;  %s824_s19 = sshll.u32 %s1520_s11, 4  ;;  %s825_s19 = int_to_ptr.hbm [resolvable:$true] %s824_s19 }
   0x4   :  { %v1075_v4 = vld [vmem:[%s1511_s2 + $0x18] sm:$0xff]  ;;  %v1074_v5 = vld [vmem:[%s1511_s2 + $0x10] sm:$0xff]  ;;  %v1073_v6 = vld [vmem:[%s1511_s2 + $0x8] sm:$0xff]  ;;  %s822_s16 = sshll.u32 %s1273_s15, 4  ;;  %s823_s16 = int_to_ptr.vmem [resolvable:$true] %s822_s16 }
   0x5   :  { %v1072_v7 = vld [vmem:[%s1511_s2] sm:$0xff]  ;;  %v1369_v9 = vld [vmem:[%s1509_s0 + $0x8] sm:$0xff]  ;;  %v1375_v10 = vld [vmem:[%s1509_s0 + $0x10] sm:$0xff]  ;;  %s1275_s2 = smov 8  }
   0x6   :  { %176 = vmatpush.bf16.msra.mxu0 %v1078_v1  ;;  %1216 = vmatpush.bf16.msra.mxu2 %v1078_v1  ;;  %v1363_v8 = vld [vmem:[%s1509_s0] sm:$0xff]  ;;  %v1381_v11 = vld [vmem:[%s1509_s0 + $0x18] sm:$0xff]  ;;  %v1387_v12 = vld [vmem:[%s1509_s0 + $0x30] sm:$0xff] }
   0x7   :  { %v1393_v13 = vld [vmem:[%s1509_s0 + $0x20] sm:$0xff]  ;;  %v1398_v14 = vld [vmem:[%s1509_s0 + $0x38] sm:$0xff]  ;;  %v1405_v15 = vld [vmem:[%s1509_s0 + $0x28] sm:$0xff] }
   0x8   :  { %v1234_v16 = vld [vmem:[%s1515_s6] ss:$0 sm:$0xff]  ;;  %v1096_v42 = vld [vmem:[%s1510_s1 + $0x38] sm:$0xff]  ;;  %v1095_v43 = vld [vmem:[%s1510_s1 + $0x30] sm:$0xff] }
   0x9   :  { %v1094_v45 = vld [vmem:[%s1510_s1 + $0x28] sm:$0xff]  ;;  %v1093_v47 = vld [vmem:[%s1510_s1 + $0x20] sm:$0xff]  ;;  %v1092_v49 = vld [vmem:[%s1510_s1 + $0x18] sm:$0xff] }
   0xa   :  { %177 = vmatpush.bf16.msra.mxu0 %v1077_v2  ;;  %1217 = vmatpush.bf16.msra.mxu2 %v1077_v2  ;;  %v1091_v54 = vld [vmem:[%s1510_s1 + $0x10] sm:$0xff]  ;;  %v1090_v55 = vld [vmem:[%s1510_s1 + $0x8] sm:$0xff]  ;;  %v1089_v56 = vld [vmem:[%s1510_s1] sm:$0xff] }
   0xb   :  { %v1088_v57 = vld [vmem:[%s1519_s10] sm:$0xff]  ;;  %v1087_v61 = vld [vmem:[%s1512_s3 + $0x38] sm:$0xff]  ;;  %v1086_v62 = vld [vmem:[%s1512_s3 + $0x30] sm:$0xff] }
   0xc   :  { %292 = vmatpush.bf16.msra.mxu1 %v1087_v61  ;;  %1223 = vmatpush.bf16.msra.mxu3 %v1087_v61  ;;  %v1085_v0 = vld [vmem:[%s1512_s3 + $0x28] sm:$0xff]  ;;  %v1084_v1 = vld [vmem:[%s1512_s3 + $0x20] sm:$0xff] }
   0xe   :  { %178 = vmatpush.bf16.msra.mxu0 %v1076_v3  ;;  %1218 = vmatpush.bf16.msra.mxu2 %v1076_v3 }
  0x10   :  { %293 = vmatpush.bf16.msra.mxu1 %v1086_v62  ;;  %1224 = vmatpush.bf16.msra.mxu3 %v1086_v62 }
  0x12   :  { %179 = vmatpush.bf16.msra.mxu0 %v1075_v4  ;;  %1219 = vmatpush.bf16.msra.mxu2 %v1075_v4  ;;  %v1083_v4 = vld [vmem:[%s1512_s3 + $0x18] sm:$0xff] }
  0x14   :  { %294 = vmatpush.bf16.msra.mxu1 %v1085_v0  ;;  %1225 = vmatpush.bf16.msra.mxu3 %v1085_v0 }
  0x16   :  { %180 = vmatpush.bf16.msra.mxu0 %v1074_v5  ;;  %1220 = vmatpush.bf16.msra.mxu2 %v1074_v5  ;;  %v1082_v5 = vld [vmem:[%s1512_s3 + $0x10] sm:$0xff] }
  0x18   :  { %295 = vmatpush.bf16.msra.mxu1 %v1084_v1  ;;  %1226 = vmatpush.bf16.msra.mxu3 %v1084_v1 }
  0x1a   :  { %181 = vmatpush.bf16.msra.mxu0 %v1073_v6  ;;  %1221 = vmatpush.bf16.msra.mxu2 %v1073_v6 }
  0x1c   :  { %296 = vmatpush.bf16.msra.mxu1 %v1083_v4  ;;  %1227 = vmatpush.bf16.msra.mxu3 %v1083_v4 }
  0x1e   :  { %182 = vmatpush.bf16.msra.mxu0 %v1072_v7  ;;  %1222 = vmatpush.bf16.msra.mxu2 %v1072_v7  ;;  %v1081_v7 = vld [vmem:[%s1512_s3 + $0x8] sm:$0xff] }
  0x20   :  { %297 = vmatpush.bf16.msra.mxu1 %v1082_v5  ;;  %1228 = vmatpush.bf16.msra.mxu3 %v1082_v5 }
  0x21   :  { %183 = vmatmul.bf16.vlgmr.msra.gmra.mxu0 %v1363_v8  ;;  %213 = vmatmul.bf16.vlgmr.msra.gmra.mxu2 %v1387_v12 }
  0x22   :  { %513 = vmatpush.bf16.msrb.mxu2 %v1096_v42 }
  0x24   :  { %298 = vmatpush.bf16.msra.mxu1 %v1081_v7  ;;  %1229 = vmatpush.bf16.msra.mxu3 %v1081_v7 }
  0x26   :  { %514 = vmatpush.bf16.msrb.mxu2 %v1095_v43 }
  0x2a   :  { %515 = vmatpush.bf16.msrb.mxu2 %v1094_v45 }
  0x2e   :  { %516 = vmatpush.bf16.msrb.mxu2 %v1093_v47 }
  0x31   :  { %188 = vmatmul.bf16.gmra.mxu0 %v1369_v9  ;;  %218 = vmatmul.bf16.gmra.mxu2 %v1398_v14 }
  0x32   :  { %517 = vmatpush.bf16.msrb.mxu2 %v1092_v49 }
  0x36   :  { %518 = vmatpush.bf16.msrb.mxu2 %v1091_v54 }
  0x3a   :  { %519 = vmatpush.bf16.msrb.mxu2 %v1090_v55 }
  0x3e   :  { %520 = vmatpush.bf16.msrb.mxu2 %v1089_v56 }
  0x41   :  { %193 = vmatmul.bf16.gmra.mxu0 %v1375_v10  ;;  %521 = vmatmul.bf16.vlgmr.msrb.gmra.mxu2 %v1088_v57 }
  0x51   :  { %198 = vmatmul.bf16.gmra.mxu0 %v1381_v11 }
  0x61   :  { %203 = vmatmul.bf16.gmra.mxu0 %v1393_v13 }
  0x71   :  { %208 = vmatmul.bf16.gmra.mxu0 %v1405_v15 }
  0x9e   :  { %v184_v17 = vpop.f32.mrf.mxu0 }
  0x9f   :  { %v185_v18 = vadd.f32 %v1234_v16, %v184_v17 }
  0xa1   :  { %341 = vxpose.xlu0.b32.start [1/16] %v185_v18, 128 }
  0xa4   :  { %v214_v40 = vpop.f32.mrf.mxu2 }
  0xa5   :  { %v215_v44 = vadd.f32 %v1234_v16, %v214_v40 }
  0xa6   :  { %v186_v19 = vpop.f32.mrf.mxu0 }
  0xa7   :  { %v187_v20 = vadd.f32 %v1234_v16, %v186_v19 }
  0xa9   :  { %342 = vxpose.xlu0.b32.cont [2/16] %v187_v20, 128 }
  0xac   :  { %v216_v46 = vpop.f32.mrf.mxu2 }
  0xad   :  { %v217_v48 = vadd.f32 %v1234_v16, %v216_v46 }
  0xae   :  { %v189_v21 = vpop.f32.mrf.mxu0 }
  0xaf   :  { %v190_v22 = vadd.f32 %v1234_v16, %v189_v21 }
  0xb1   :  { %343 = vxpose.xlu0.b32.cont [3/16] %v190_v22, 128 }
  0xb4   :  { %v219_v50 = vpop.f32.mrf.mxu2 }
  0xb5   :  { %v220_v51 = vadd.f32 %v1234_v16, %v219_v50 }
  0xb6   :  { %v191_v23 = vpop.f32.mrf.mxu0 }
  0xb7   :  { %v192_v24 = vadd.f32 %v1234_v16, %v191_v23 }
  0xb9   :  { %344 = vxpose.xlu0.b32.cont [4/16] %v192_v24, 128 }
  0xbc   :  { %v221_v52 = vpop.f32.mrf.mxu2 }
  0xbd   :  { %v222_v53 = vadd.f32 %v1234_v16, %v221_v52 }
  0xbe   :  { %v194_v25 = vpop.f32.mrf.mxu0 }
  0xbf   :  { %v195_v26 = vadd.f32 %v1234_v16, %v194_v25 }
  0xc1   :  { %345 = vxpose.xlu0.b32.cont [5/16] %v195_v26, 128 }
  0xc6   :  { %v196_v27 = vpop.f32.mrf.mxu0 }
  0xc7   :  { %v197_v28 = vadd.f32 %v1234_v16, %v196_v27 }
  0xc9   :  { %346 = vxpose.xlu0.b32.cont [6/16] %v197_v28, 128 }
  0xce   :  { %v199_v29 = vpop.f32.mrf.mxu0 }
  0xcf   :  { %v200_v30 = vadd.f32 %v1234_v16, %v199_v29 }
  0xd1   :  { %347 = vxpose.xlu0.b32.cont [7/16] %v200_v30, 128 }
  0xd6   :  { %v201_v31 = vpop.f32.mrf.mxu0 }
  0xd7   :  { %v202_v32 = vadd.f32 %v1234_v16, %v201_v31 }
  0xd9   :  { %348 = vxpose.xlu0.b32.cont [8/16] %v202_v32, 128 }
  0xde   :  { %v204_v33 = vpop.f32.mrf.mxu0 }
  0xdf   :  { %v205_v34 = vadd.f32 %v1234_v16, %v204_v33 }
  0xe1   :  { %349 = vxpose.xlu0.b32.cont [9/16] %v205_v34, 128 }
  0xe6   :  { %v206_v35 = vpop.f32.mrf.mxu0 }
  0xe7   :  { %v207_v36 = vadd.f32 %v1234_v16, %v206_v35 }
  0xe9   :  { %350 = vxpose.xlu0.b32.cont [10/16] %v207_v36, 128 }
  0xee   :  { %v209_v37 = vpop.f32.mrf.mxu0 }
  0xef   :  { %v210_v38 = vadd.f32 %v1234_v16, %v209_v37 }
  0xf1   :  { %351 = vxpose.xlu0.b32.cont [11/16] %v210_v38, 128 }
  0xf6   :  { %v211_v39 = vpop.f32.mrf.mxu0 }
  0xf7   :  { %v212_v41 = vadd.f32 %v1234_v16, %v211_v39  ;;  %v1080_v16 = vld [vmem:[%s1512_s3] sm:$0xff]  ;;  %s1274_s3 = smov 128  }
  0xf8   :  { %299 = vmatpush.bf16.msra.mxu1 %v1080_v16  ;;  %1230 = vmatpush.bf16.msra.mxu3 %v1080_v16 }
  0xf9   :  { %352 = vxpose.xlu0.b32.cont [12/16] %v212_v41, 128  ;;  %v1236_v41 = vld [vmem:[%s1516_s7] ss:$0 sm:$0xff] }
  0xfb   :  { %300 = vmatmul.bf16.vlgmr.msra.gmra.mxu1 %v1363_v8  ;;  %330 = vmatmul.bf16.vlgmr.msra.gmra.mxu3 %v1387_v12 }
 0x101   :  { %353 = vxpose.xlu0.b32.cont [13/16] %v215_v44, 128 }
 0x109   :  { %354 = vxpose.xlu0.b32.cont [14/16] %v217_v48, 128 }
 0x10b   :  { %305 = vmatmul.bf16.gmra.mxu1 %v1369_v9  ;;  %335 = vmatmul.bf16.gmra.mxu3 %v1398_v14 }
 0x111   :  { %355 = vxpose.xlu0.b32.cont [15/16] %v220_v51, 128 }
 0x119   :  { %356 = vxpose.xlu0.b32.end [16/16] %v222_v53, 128 }
 0x11b   :  { %310 = vmatmul.bf16.gmra.mxu1 %v1375_v10 }
 0x12b   :  { %315 = vmatmul.bf16.gmra.mxu1 %v1381_v11  ;;  %v522_v11 = vpop.f32.mrf.mxu2 }
 0x133   :  { %v524_v35 = vpop.f32.mrf.mxu2 }
 0x13b   :  { %320 = vmatmul.bf16.gmra.mxu1 %v1393_v13  ;;  %v1235_v13 = vld [vmem:[%s1514_s5] ss:$0 sm:$0xff] }
 0x13c   :  { %v525_v37 = vadd.f32 %v1235_v13, %v524_v35 }
 0x145   :  { %v357_v58 = vpop.trf.xlu0 }
 0x14b   :  { %325 = vmatmul.bf16.gmra.mxu1 %v1405_v15  ;;  %v523_v15 = vadd.f32 %v1235_v13, %v522_v11 }
 0x14d   :  { %v358_v59 = vpop.trf.xlu0  ;;  %v527_v39 = vpack.c.bf16 %v525_v37, %v523_v15 }
 0x14e   :  { %v1124_v60 = vpack.c.bf16 %v358_v59, %v357_v58 }
 0x150   :  { %1125 = vst [vmem:[#allocation2 + $0x30] sm:$0xff] %v1124_v60  }
 0x155   :  { %v359_v63 = vpop.trf.xlu0 }
 0x157   :  { %v1097_v38 = vld [vmem:[#allocation2 + $0x30] sm:$0xff] }
 0x15d   :  { %v360_v2 = vpop.trf.xlu0 }
 0x15e   :  { %v1129_v3 = vpack.c.bf16 %v360_v2, %v359_v63 }
 0x160   :  { %1201 = vst [vmem:[#allocation2] sm:$0xff] %v1129_v3  }
 0x165   :  { %v361_v6 = vpop.trf.xlu0 }
 0x167   :  { %v1098_v36 = vld [vmem:[#allocation2] sm:$0xff] }
 0x16d   :  { %v362_v17 = vpop.trf.xlu0 }
 0x16e   :  { %v1134_v18 = vpack.c.bf16 %v362_v17, %v361_v6 }
 0x170   :  { %1202 = vst [vmem:[#allocation2 + $0x18] sm:$0xff] %v1134_v18  }
 0x175   :  { %v363_v19 = vpop.trf.xlu0 }
 0x177   :  { %v1099_v34 = vld [vmem:[#allocation2 + $0x18] sm:$0xff] }
 0x178   :  { %v301_v40 = vpop.f32.mrf.mxu1 }
 0x179   :  { %v302_v43 = vadd.f32 %v1236_v41, %v301_v40  ;;  %v1119_v40 = vld [vmem:[%s1513_s4 + $0x30] sm:$0xff] }
 0x17d   :  { %v364_v20 = vpop.trf.xlu0 }
 0x17e   :  { %v1139_v21 = vpack.c.bf16 %v364_v20, %v363_v19  ;;  %v331_v42 = vpop.f32.mrf.mxu3 }
 0x17f   :  { %v332_v47 = vadd.f32 %v1236_v41, %v331_v42  ;;  %v1117_v42 = vld [vmem:[%s1513_s4 + $0x20] sm:$0xff] }
 0x180   :  { %1203 = vst [vmem:[#allocation2 + $0x10] sm:$0xff] %v1139_v21   ;;  %v303_v44 = vpop.f32.mrf.mxu1 }
 0x181   :  { %v304_v45 = vadd.f32 %v1236_v41, %v303_v44  ;;  %v1115_v44 = vld [vmem:[%s1513_s4 + $0x10] sm:$0xff] }
 0x183   :  { %v1164_v46 = vpack.c.bf16 %v304_v45, %v302_v43  ;;  %v1116_v43 = vld [vmem:[%s1513_s4 + $0x18] sm:$0xff]  ;;  %v1114_v45 = vld [vmem:[%s1513_s4 + $0x8] sm:$0xff] }
 0x185   :  { %v365_v22 = vpop.trf.xlu0  ;;  %1165 = vst [vmem:[#allocation3] sm:$0xff] %v1164_v46  }
 0x186   :  { %v333_v48 = vpop.f32.mrf.mxu3 }
 0x187   :  { %v1100_v33 = vld [vmem:[#allocation2 + $0x10] sm:$0xff]  ;;  %v334_v49 = vadd.f32 %v1236_v41, %v333_v48 }
 0x188   :  { %v306_v50 = vpop.f32.mrf.mxu1 }
 0x189   :  { %v1194_v51 = vpack.c.bf16 %v334_v49, %v332_v47  ;;  %v307_v53 = vadd.f32 %v1236_v41, %v306_v50  ;;  %v1113_v47 = vld [vmem:[%s1513_s4] sm:$0xff] }
 0x18b   :  { %1213 = vst [vmem:[#allocation3 + $0x30] sm:$0xff] %v1194_v51  }
 0x18d   :  { %v366_v23 = vpop.trf.xlu0 }
 0x18e   :  { %v1144_v24 = vpack.c.bf16 %v366_v23, %v365_v22  ;;  %v336_v52 = vpop.f32.mrf.mxu3 }
 0x18f   :  { %v337_v57 = vadd.f32 %v1236_v41, %v336_v52 }
 0x190   :  { %1204 = vst [vmem:[#allocation2 + $0x8] sm:$0xff] %v1144_v24   ;;  %v308_v54 = vpop.f32.mrf.mxu1 }
 0x191   :  { %v309_v55 = vadd.f32 %v1236_v41, %v308_v54 }
 0x192   :  { %v1111_v3 = vld [vmem:[#allocation3 + $0x30] sm:$0xff] }
 0x193   :  { %v1169_v56 = vpack.c.bf16 %v309_v55, %v307_v53 }
 0x195   :  { %v367_v25 = vpop.trf.xlu0  ;;  %1208 = vst [vmem:[#allocation3 + $0x18] sm:$0xff] %v1169_v56  }
 0x196   :  { %v338_v58 = vpop.f32.mrf.mxu3 }
 0x197   :  { %v1101_v32 = vld [vmem:[#allocation2 + $0x8] sm:$0xff]  ;;  %v339_v59 = vadd.f32 %v1236_v41, %v338_v58 }
 0x198   :  { %v311_v60 = vpop.f32.mrf.mxu1 }
 0x199   :  { %v1199_v61 = vpack.c.bf16 %v339_v59, %v337_v57  ;;  %v312_v62 = vadd.f32 %v1236_v41, %v311_v60 }
 0x19b   :  { %1214 = vst [vmem:[#allocation3 + $0x38] sm:$0xff] %v1199_v61  }
 0x19d   :  { %v368_v26 = vpop.trf.xlu0 }
 0x19e   :  { %v1149_v27 = vpack.c.bf16 %v368_v26, %v367_v25 }
 0x1a0   :  { %1205 = vst [vmem:[#allocation2 + $0x20] sm:$0xff] %v1149_v27   ;;  %v313_v63 = vpop.f32.mrf.mxu1 }
 0x1a1   :  { %v314_v0 = vadd.f32 %v1236_v41, %v313_v63 }
 0x1a2   :  { %v1112_v2 = vld [vmem:[#allocation3 + $0x38] sm:$0xff] }
 0x1a3   :  { %v1174_v1 = vpack.c.bf16 %v314_v0, %v312_v62  ;;  %689 = vmatpush.bf16.msra.mxu2 %v1112_v2 }
 0x1a5   :  { %v369_v8 = vpop.trf.xlu0  ;;  %1209 = vst [vmem:[#allocation3 + $0x10] sm:$0xff] %v1174_v1  }
 0x1a7   :  { %v1102_v31 = vld [vmem:[#allocation2 + $0x20] sm:$0xff]  ;;  %690 = vmatpush.bf16.msra.mxu2 %v1111_v3 }
 0x1a8   :  { %v316_v4 = vpop.f32.mrf.mxu1 }
 0x1a9   :  { %v317_v5 = vadd.f32 %v1236_v41, %v316_v4 }
 0x1ad   :  { %v370_v12 = vpop.trf.xlu0 }
 0x1ae   :  { %v1154_v28 = vpack.c.bf16 %v370_v12, %v369_v8 }
 0x1b0   :  { %1206 = vst [vmem:[#allocation2 + $0x28] sm:$0xff] %v1154_v28   ;;  %v318_v6 = vpop.f32.mrf.mxu1  ;;  %v1107_v28 = vld [vmem:[#allocation3 + $0x10] sm:$0xff] }
 0x1b1   :  { %v319_v7 = vadd.f32 %v1236_v41, %v318_v6 }
 0x1b3   :  { %v1179_v16 = vpack.c.bf16 %v319_v7, %v317_v5 }
 0x1b5   :  { %v371_v9 = vpop.trf.xlu0  ;;  %1210 = vst [vmem:[#allocation3 + $0x20] sm:$0xff] %v1179_v16  }
 0x1b7   :  { %v1103_v10 = vld [vmem:[#allocation2 + $0x28] sm:$0xff] }
 0x1b8   :  { %v321_v17 = vpop.f32.mrf.mxu1 }
 0x1b9   :  { %v322_v18 = vadd.f32 %v1236_v41, %v321_v17 }
 0x1bc   :  { %v1108_v12 = vld [vmem:[#allocation3 + $0x20] sm:$0xff] }
 0x1bd   :  { %v372_v14 = vpop.trf.xlu0 }
 0x1be   :  { %v1159_v29 = vpack.c.bf16 %v372_v14, %v371_v9  ;;  %v1106_v9 = vld [vmem:[#allocation3 + $0x18] sm:$0xff]  ;;  %v1105_v14 = vld [vmem:[#allocation3] sm:$0xff] }
 0x1c0   :  { %1207 = vst [vmem:[#allocation2 + $0x38] sm:$0xff] %v1159_v29   ;;  %v323_v19 = vpop.f32.mrf.mxu1  ;;  %v1237_v29 = vld [vmem:[%s1518_s9] ss:$0 sm:$0xff] }
 0x1c1   :  { %v324_v20 = vadd.f32 %v1236_v41, %v323_v19 }
 0x1c3   :  { %v1184_v21 = vpack.c.bf16 %v324_v20, %v322_v18  ;;  %v1238_v18 = vld [vmem:[%s1517_s8] ss:$0 sm:$0xff] }
 0x1c5   :  { %1211 = vst [vmem:[#allocation3 + $0x28] sm:$0xff] %v1184_v21  }
 0x1c7   :  { %v1104_v30 = vld [vmem:[#allocation2 + $0x38] sm:$0xff] }
 0x1c8   :  { %596 = vmatpush.bf16.msrb.mxu3 %v1104_v30  ;;  %v326_v22 = vpop.f32.mrf.mxu1 }
 0x1c9   :  { %v327_v23 = vadd.f32 %v1236_v41, %v326_v22 }
 0x1cc   :  { %597 = vmatpush.bf16.msrb.mxu3 %v1103_v10  ;;  %v1109_v8 = vld [vmem:[#allocation3 + $0x28] sm:$0xff] }
 0x1d0   :  { %598 = vmatpush.bf16.msrb.mxu3 %v1102_v31  ;;  %v328_v24 = vpop.f32.mrf.mxu1 }
 0x1d1   :  { %v329_v25 = vadd.f32 %v1236_v41, %v328_v24  ;;  %v1118_v41 = vld [vmem:[%s1513_s4 + $0x28] sm:$0xff] }
 0x1d3   :  { %v1189_v26 = vpack.c.bf16 %v329_v25, %v327_v23 }
 0x1d4   :  { %599 = vmatpush.bf16.msrb.mxu3 %v1101_v32 }
 0x1d5   :  { %1212 = vst [vmem:[#allocation3 + $0x8] sm:$0xff] %v1189_v26  }
 0x1d8   :  { %600 = vmatpush.bf16.msrb.mxu3 %v1100_v33 }
 0x1dc   :  { %601 = vmatpush.bf16.msrb.mxu3 %v1099_v34  ;;  %v1110_v27 = vld [vmem:[#allocation3 + $0x8] sm:$0xff] }
 0x1dd   :  { %691 = vmatpush.bf16.msra.mxu2 %v1110_v27 }
 0x1e0   :  { %602 = vmatpush.bf16.msrb.mxu3 %v1098_v36 }
 0x1e1   :  { %692 = vmatpush.bf16.msra.mxu2 %v1109_v8 }
 0x1e4   :  { %603 = vmatpush.bf16.msrb.mxu3 %v1097_v38 }
 0x1e5   :  { %693 = vmatpush.bf16.msra.mxu2 %v1108_v12 }
 0x1e7   :  { %604 = vmatmul.bf16.vlgmr.msrb.gmra.mxu3 %v527_v39  ;;  %v1120_v39 = vld [vmem:[%s1513_s4 + $0x38] sm:$0xff] }
 0x1e8   :  { %802 = vmatpush.bf16.msra.mxu3 %v1120_v39 }
 0x1e9   :  { %694 = vmatpush.bf16.msra.mxu2 %v1107_v28 }
 0x1ec   :  { %803 = vmatpush.bf16.msra.mxu3 %v1119_v40 }
 0x1ed   :  { %695 = vmatpush.bf16.msra.mxu2 %v1106_v9 }
 0x1f0   :  { %804 = vmatpush.bf16.msra.mxu3 %v1118_v41 }
 0x1f1   :  { %696 = vmatpush.bf16.msra.mxu2 %v1105_v14 }
 0x1f4   :  { %805 = vmatpush.bf16.msra.mxu3 %v1117_v42 }
 0x1f8   :  { %806 = vmatpush.bf16.msra.mxu3 %v1116_v43 }
 0x1fc   :  { %807 = vmatpush.bf16.msra.mxu3 %v1115_v44 }
 0x200   :  { %808 = vmatpush.bf16.msra.mxu3 %v1114_v45 }
 0x204   :  { %809 = vmatpush.bf16.msra.mxu3 %v1113_v47 }
 0x26a   :  { %v605_v30 = vpop.f32.mrf.mxu3 }
 0x26b   :  { %v606_v10 = vadd.f32 %v1237_v29, %v605_v30 }
 0x26d   :  { %610 = vmax.xlane.f32.xlu1 %v606_v10 }
 0x272   :  { %v607_v31 = vpop.f32.mrf.mxu3 }
 0x273   :  { %v608_v32 = vadd.f32 %v1237_v29, %v607_v31 }
 0x275   :  { %612 = vmax.xlane.f32.xlu1 %v608_v32 }
 0x2e0   :  { %v611_v11 = vpop.xlane.xlu1 %610 }
 0x2e1   :  { %v614_v33 = vsub.f32 %v606_v10, %v611_v11 }
 0x2e3   :  { %v616_v34 = vmul.f32 1.442695, %v614_v33 }
 0x2e5   :  { %1239 = vpow2.f32 %v616_v34 }
 0x2e8   :  { %v613_v13 = vpop.xlane.xlu1 %612 }
 0x2e9   :  { %v615_v35 = vsub.f32 %v608_v32, %v613_v13 }
 0x2eb   :  { %v1240_v36 = vpop.eup %1239  ;;  %v618_v15 = vmul.f32 1.442695, %v615_v35 }
 0x2ec   :  { %620 = vadd.xlane.f32.xlu2 %v1240_v36 }
 0x2ed   :  { %1241 = vpow2.f32 %v618_v15 }
 0x2f3   :  { %v1242_v37 = vpop.eup %1241 }
 0x2f4   :  { %622 = vadd.xlane.f32.xlu2 %v1242_v37  ;;  %v624_v38 = vpack.c.bf16 %v1242_v37, %v1240_v36 }
 0x2f6   :  { %697 = vmatmul.bf16.vlgmr.msra.gmra.mxu2 %v624_v38 }
 0x35f   :  { %v621_v46 = vpop.xlane.xlu2 %620 }
 0x360   :  { %1243 = vrcp.f32 %v621_v46  ;;  %vm708_vm2 = vweird.f32 %v621_v46  ;;  %v714_v61 = vand.u32 2147483648, %v621_v46  ;;  %v712_v62 = vand.u32 2147483647, %v621_v46 }
 0x362   :  { %v715_v2 = vor.u32 1.1754944e-38, %v714_v61  ;;  %vm713_vm6 = vcmp.eq.f32.partialorder %v712_v62, 8.507059e+37 }
 0x366   :  { %v1244_v49 = vpop.eup %1243 }
 0x367   :  { %v623_v48 = vpop.xlane.xlu2 %622  ;;  %v704_v51 = vmul.f32 %v1244_v49, %v621_v46  ;;  %vm709_vm0 = vweird.f32 %v1244_v49 }
 0x368   :  { %1245 = vrcp.f32 %v623_v48  ;;  %v728_v60 = vand.u32 2147483648, %v623_v48  ;;  %vm722_vm3 = vweird.f32 %v623_v48  ;;  %vm710_vm4 = vmor %vm708_vm2, %vm709_vm0  ;;  %v726_v63 = vand.u32 2147483647, %v623_v48 }
 0x369   :  { %v705_v53 = vsub.f32 1.0, %v704_v51 }
 0x36a   :  { %v729_v3 = vor.u32 1.1754944e-38, %v728_v60  ;;  %vm727_vm7 = vcmp.eq.f32.partialorder %v726_v63, 8.507059e+37 }
 0x36b   :  { %v706_v56 = vmul.f32 %v1244_v49, %v705_v53 }
 0x36d   :  { %v707_v58 = vadd.f32 %v1244_v49, %v706_v56 }
 0x36e   :  { %v1246_v50 = vpop.eup %1245 }
 0x36f   :  { %v718_v52 = vmul.f32 %v1246_v50, %v623_v48  ;;  %vm723_vm1 = vweird.f32 %v1246_v50  ;;  %v711_v0 = vsel %vm710_vm4, %v1244_v49, %v707_v58 }
 0x370   :  { %vm724_vm5 = vmor %vm722_vm3, %vm723_vm1  ;;  %v716_v4 = vsel %vm713_vm6, %v715_v2, %v711_v0 }
 0x371   :  { %v719_v54 = vsub.f32 1.0, %v718_v52 }
 0x373   :  { %v720_v55 = vmul.f32 %v1246_v50, %v719_v54 }
 0x375   :  { %v721_v59 = vadd.f32 %v1246_v50, %v720_v55 }
 0x377   :  { %v725_v1 = vsel %vm724_vm5, %v1246_v50, %v721_v59 }
 0x378   :  { %v730_v6 = vsel %vm727_vm7, %v729_v3, %v725_v1 }
 0x379   :  { %v698_v57 = vpop.f32.mrf.mxu2 }
 0x37a   :  { %v731_v7 = vmul.f32 %v716_v4, %v698_v57 }
 0x381   :  { %v700_v5 = vpop.f32.mrf.mxu2 }
 0x382   :  { %v732_v16 = vmul.f32 %v730_v6, %v700_v5 }
 0x384   :  { %v733_v17 = vpack.c.bf16 %v732_v16, %v731_v7 }
 0x386   :  { %810 = vmatmul.bf16.vlgmr.msra.gmra.mxu3 %v733_v17 }
 0x409   :  { %v811_v19 = vpop.f32.mrf.mxu3 }
 0x40a   :  { %v812_v20 = vadd.f32 %v1238_v18, %v811_v19 }
 0x40c   :  { %816 = vst [vmem:[#allocation4] sm:$0xff] %v812_v20 }
 0x411   :  { %v813_v21 = vpop.f32.mrf.mxu3 }
 0x412   :  { %v814_v22 = vadd.f32 %v1238_v18, %v813_v21 }
 0x414   :  { %817 = vst [vmem:[#allocation4 + $0x8] sm:$0xff] %v814_v22 }
 0x415   :  { %830 = dma.vmem_to_hbm [thread:$0]  %s823_s16, 256, %s825_s19, [#allocation5], %s1274_s3, %s1274_s3, %s1275_s2  }
 0x416   :  { %1271 = dma.done.wait [#allocation5], 256  }
 0x417   :  { %1272 = vsyncadd [#allocation5], 4294967040 }
 0x418   :  { %835 = vsyncpa [#allocation5], 1 }

</bundles_post_ra>
